<compile_context>
chip_gen: v7x
topology: tpu7x:2x2x1
jax: 0.10.0
libtpu: 0.0.40
codegen_flags: <defaults>
</compile_context>

<pallas_src>
import math

import jax
import jax.numpy as jnp
from jax.experimental import pallas as pl
from jax.experimental.pallas import tpu as pltpu


def _lora_kernel(alpha_ref, x_ref, a_ref, b_ref, o_ref, xa_ref):
    k = pl.program_id(1)

    @pl.when(k == 0)
    def _():
        xa_ref[...] = jnp.zeros_like(xa_ref)

    # Partial reduction over in_dim: (tm, tk) @ (tk, rank) on the MXU,
    # accumulated in f32.
    xa_ref[...] += jnp.dot(x_ref[...], a_ref[...],
                           preferred_element_type=jnp.float32)

    @pl.when(k == pl.num_programs(1) - 1)
    def _():
        alpha = alpha_ref[0, 0]                       # SMEM scalar
        xa = alpha * xa_ref[...]                      # scale the small (tm, rank) tile
        o_ref[...] = jnp.dot(xa, b_ref[...],
                             preferred_element_type=jnp.float32
                             ).astype(o_ref.dtype)


def _pick_tile(dim, candidates):
    for t in candidates:
        if t <= dim and dim % t == 0:
            return t
    return dim  # fall back to the full (untiled) dimension


def lora_forward(x, A, B, alpha):
    """y = alpha * ((x @ A) @ B).  x: [..., in_dim]; A: [in_dim, rank]; B: [rank, out_dim]."""
    *lead, in_dim = x.shape
    rank, out_dim = B.shape
    M = 1
    for d in lead:
        M *= d
    x2 = x.reshape(M, in_dim)

    # Tile choice: K tiles 256-aligned for the 256-wide MXU (128 ok on v5e),
    # M tiles capped at 512 rows to keep the double-buffered VMEM footprint
    # small on every generation (incl. v7x's 64 MiB VMEM).
    tm = _pick_tile(M, (512, 256, 128, 64, 32, 16, 8))
    tk = _pick_tile(in_dim, (256, 128))

    alpha_arr = jnp.asarray(alpha, jnp.float32).reshape(1, 1)

    grid = (M // tm, in_dim // tk)

    out = pl.pallas_call(
        _lora_kernel,
        out_shape=jax.ShapeDtypeStruct((M, out_dim), x.dtype),
        grid_spec=pltpu.PrefetchScalarGridSpec(
            num_scalar_prefetch=0,
            grid=grid,
            in_specs=[
                # runtime scalar alpha lives in SMEM (no recompile when it changes)
                pl.BlockSpec(memory_space=pltpu.SMEM),
                pl.BlockSpec((tm, tk), lambda i, k: (i, k)),          # x tile
                pl.BlockSpec((tk, rank), lambda i, k: (k, 0)),        # A tile
                pl.BlockSpec((rank, out_dim), lambda i, k: (0, 0)),   # B (tiny, whole)
            ],
            out_specs=pl.BlockSpec((tm, out_dim), lambda i, k: (i, 0)),
            scratch_shapes=[pltpu.VMEM((tm, rank), jnp.float32)],     # x@A accumulator
        ),
        compiler_params=pltpu.CompilerParams(
            dimension_semantics=("parallel", "arbitrary"),
        ),
    )(alpha_arr, x2, A, B)

    return out.reshape(*lead, out_dim)


def reference(x, A, B, alpha):
    return alpha * ((x @ A) @ B)


if __name__ == "__main__":
    # Small shapes consistent with the module: a token batch through a rank-4
    # LoRA adapter. out_dim chosen as a multiple of 128 for lane-dense stores;
    # in_dim = 2 * tk so the K-reduction grid actually has 2 steps.
    batch, seq, in_dim, out_dim, rank, alpha = 2, 8, 512, 128, 4, 2.0

    key = jax.random.PRNGKey(0)
    k_x, k_a, k_b = jax.random.split(key, 3)

    x = jax.random.normal(k_x, (batch, seq, in_dim), dtype=jnp.float32)

    # A ~ kaiming-uniform-style init; B is zeros in the module. A zero B makes
    # the output trivially zero, so also exercise the kernel with a nonzero B.
    a_bound = 1.0 / math.sqrt(rank)
    A = jax.random.uniform(k_a, (in_dim, rank), jnp.float32, -a_bound, a_bound)
    B_zero = jnp.zeros((rank, out_dim), jnp.float32)
    B_rand = 0.1 * jax.random.normal(k_b, (rank, out_dim), jnp.float32)

    for B in (B_zero, B_rand):
        y = lora_forward(x, A, B, alpha)
        jax.block_until_ready(y)
        y_ref = reference(x, A, B, alpha)
        assert y.shape == (batch, seq, out_dim)
        assert jnp.allclose(y, y_ref, atol=1e-4, rtol=1e-4), "mismatch vs reference"

    print("KERNEL_OK")
</pallas_src>

<mosaic_0001>
module attributes {stable_mosaic.version = 11 : i64} {
  func.func @_lora_kernel(%arg0: i32, %arg1: i32, %arg2: memref<1x1xf32, #tpu.memory_space<smem>>, %arg3: memref<16x256xf32, #tpu.memory_space<vmem>>, %arg4: memref<256x4xf32, #tpu.memory_space<vmem>>, %arg5: memref<4x128xf32, #tpu.memory_space<vmem>>, %arg6: memref<16x128xf32, #tpu.memory_space<vmem>>, %arg7: memref<16x4xf32, #tpu.memory_space<vmem>>) attributes {dimension_semantics = [#tpu.dimension_semantics<parallel>, #tpu.dimension_semantics<arbitrary>], iteration_bounds = array<i64: 1, 2>, scalar_prefetch = 0 : i64, scratch_operands = 1 : i64, tpu.core_type = #tpu.core_type<tc>, window_params = [{transform_indices = @transform_0, window_bounds = array<i64: 1, 1>}, {transform_indices = @transform_1, window_bounds = array<i64: 16, 256>}, {transform_indices = @transform_2, window_bounds = array<i64: 256, 4>}, {pipeline_mode = #tpu.pipeline_mode<synchronous>, transform_indices = @transform_3, window_bounds = array<i64: 4, 128>}, {transform_indices = @transform_4, window_bounds = array<i64: 16, 128>}]} {
    %c0_i32 = arith.constant 0 : i32
    %0 = arith.cmpi eq, %arg1, %c0_i32 : i32
    %1 = arith.extui %0 : i1 to i32
    %c0_i32_0 = arith.constant 0 : i32
    %2 = arith.cmpi ne, %1, %c0_i32_0 : i32
    scf.if %2 {
      %cst_9 = arith.constant 0.000000e+00 : f32
      %12 = vector.broadcast %cst_9 : f32 to vector<16x4xf32>
      %c0_10 = arith.constant 0 : index
      %c0_11 = arith.constant 0 : index
      %13 = vector.load %arg7[%c0_10, %c0_11] : memref<16x4xf32, #tpu.memory_space<vmem>>, vector<16x4xf32>
      tpu.vector_store %arg7[%c0_10, %c0_11], %12 {strides = array<i32>} : memref<16x4xf32, #tpu.memory_space<vmem>>, vector<16x4xf32>,
    } else {
    }
    %c0 = arith.constant 0 : index
    %c0_1 = arith.constant 0 : index
    %3 = vector.load %arg7[%c0, %c0_1] : memref<16x4xf32, #tpu.memory_space<vmem>>, vector<16x4xf32>
    %c0_2 = arith.constant 0 : index
    %c0_3 = arith.constant 0 : index
    %4 = vector.load %arg3[%c0_2, %c0_3] : memref<16x256xf32, #tpu.memory_space<vmem>>, vector<16x256xf32>
    %c0_4 = arith.constant 0 : index
    %c0_5 = arith.constant 0 : index
    %5 = vector.load %arg4[%c0_4, %c0_5] : memref<256x4xf32, #tpu.memory_space<vmem>>, vector<256x4xf32>
    %cst = arith.constant dense<0.000000e+00> : vector<16x4xf32>
    %6 = tpu.matmul %4, %5, %cst {dimension_numbers = #tpu.dot_dimension_numbers<[1], [0], [0], [1], [0, 0, 1, 1], [], []>} : vector<16x256xf32>, vector<256x4xf32>, vector<16x4xf32> -> vector<16x4xf32>
    %7 = arith.addf %3, %6 : vector<16x4xf32>
    %c0_6 = arith.constant 0 : index
    %c0_7 = arith.constant 0 : index
    %8 = vector.load %arg7[%c0_6, %c0_7] : memref<16x4xf32, #tpu.memory_space<vmem>>, vector<16x4xf32>
    tpu.vector_store %arg7[%c0_6, %c0_7], %7 {strides = array<i32>} : memref<16x4xf32, #tpu.memory_space<vmem>>, vector<16x4xf32>,
    %c1_i32 = arith.constant 1 : i32
    %9 = arith.cmpi eq, %arg1, %c1_i32 : i32
    %10 = arith.extui %9 : i1 to i32
    %c0_i32_8 = arith.constant 0 : i32
    %11 = arith.cmpi ne, %10, %c0_i32_8 : i32
    scf.if %11 {
      %c0_9 = arith.constant 0 : index
      %c0_10 = arith.constant 0 : index
      %12 = memref.load %arg2[%c0_9, %c0_10] : memref<1x1xf32, #tpu.memory_space<smem>>
      %c0_11 = arith.constant 0 : index
      %c0_12 = arith.constant 0 : index
      %13 = vector.load %arg7[%c0_11, %c0_12] : memref<16x4xf32, #tpu.memory_space<vmem>>, vector<16x4xf32>
      %14 = vector.broadcast %12 : f32 to vector<16x4xf32>
      %15 = arith.mulf %14, %13 : vector<16x4xf32>
      %c0_13 = arith.constant 0 : index
      %c0_14 = arith.constant 0 : index
      %16 = vector.load %arg5[%c0_13, %c0_14] : memref<4x128xf32, #tpu.memory_space<vmem>>, vector<4x128xf32>
      %cst_15 = arith.constant dense<0.000000e+00> : vector<16x128xf32>
      %17 = tpu.matmul %15, %16, %cst_15 {dimension_numbers = #tpu.dot_dimension_numbers<[1], [0], [0], [1], [0, 0, 1, 1], [], []>} : vector<16x4xf32>, vector<4x128xf32>, vector<16x128xf32> -> vector<16x128xf32>
      %c0_16 = arith.constant 0 : index
      %c0_17 = arith.constant 0 : index
      %18 = vector.load %arg6[%c0_16, %c0_17] : memref<16x128xf32, #tpu.memory_space<vmem>>, vector<16x128xf32>
      tpu.vector_store %arg6[%c0_16, %c0_17], %17 {strides = array<i32>} : memref<16x128xf32, #tpu.memory_space<vmem>>, vector<16x128xf32>,
    } else {
    }
    return
  }
  func.func @transform_0(%arg0: i32, %arg1: i32) -> (i32, i32) {
    %c0_i32 = arith.constant 0 : i32
    %c0_i32_0 = arith.constant 0 : i32
    %c0_i32_1 = arith.constant 0 : i32
    return %c0_i32, %c0_i32_0 : i32, i32
  }
  func.func @transform_1(%arg0: i32, %arg1: i32) -> (i32, i32) {
    %c0_i32 = arith.constant 0 : i32
    return %arg0, %arg1 : i32, i32
  }
  func.func @transform_2(%arg0: i32, %arg1: i32) -> (i32, i32) {
    %c0_i32 = arith.constant 0 : i32
    %c0_i32_0 = arith.constant 0 : i32
    return %arg1, %c0_i32 : i32, i32
  }
  func.func @transform_3(%arg0: i32, %arg1: i32) -> (i32, i32) {
    %c0_i32 = arith.constant 0 : i32
    %c0_i32_0 = arith.constant 0 : i32
    %c0_i32_1 = arith.constant 0 : i32
    return %c0_i32, %c0_i32_0 : i32, i32
  }
  func.func @transform_4(%arg0: i32, %arg1: i32) -> (i32, i32) {
    %c0_i32 = arith.constant 0 : i32
    %c0_i32_0 = arith.constant 0 : i32
    return %arg0, %c0_i32 : i32, i32
  }
}

</mosaic_0001>

<bundles_post_ra>
// kernel: tpu_custom_call.1
= control target key start
LH: loop header
LB: loop body
LE: loop exit
PB: predicated region body
PF: predicated region fallthrough
CT: control target
= control target key end

     0   :  { %s973_s0 = inlined_call_operand.<no memory space> [shape: f32[1,1], index: 0, kind: input, shape index: {}]   ;;  %s974_s1 = inlined_call_operand.vmem [shape: f32[16,512], index: 1, kind: input, shape index: {}]   ;;  %s975_s2 = inlined_call_operand.vmem [shape: f32[512,4], index: 2, kind: input, shape index: {}]   ;;  %s976_s3 = inlined_call_operand.vmem [shape: f32[4,128], index: 3, kind: input, shape index: {}]   ;;  %s977_s4 = inlined_call_operand.hbm [shape: f32[16,128], index: 4, kind: output, shape index: {}]  }
   0x1   :  { %9 = sst [smem:[#allocation3]] %s973_s0 }
   0x2   :  { %10 = vsyncpa [#allocation6], 0  ;;  %s830_s17 = smov 0   ;;  %s832_s18 = smov 0  }
   0x3   :  { %s834_s19 = smov 0   ;;  %s836_s20 = smov 0  }
   0x4   :  { %s838_s21 = smov 0  }
   0x5 LB: > { %s564_s0 = sadd.s32 4294967295, %s796_s21   ;;  %s25_s22 = sadd.s32 1, %s792_s20  ;;  %s796_s21 = sphi %s838_s21, %s16_s21   ;;  %s792_s20 = sphi %s836_s20, %s982_s20   ;;  %s788_s19 = sphi %s834_s19, %s981_s19   ;;  %s784_s18 = sphi %s832_s18, %s980_s18   ;;  %s780_s17 = sphi %s830_s17, %s979_s17  }
   0x6   : > { %p26_p0 = scmp.ge.s32.totalorder %s25_s22, 2  ;;  %p65_p1 = scmp.ne.s32.totalorder %s784_s18, %s780_s17 }
   0x7   : > { %p66_p2 = scmp.eq.s32.totalorder %s796_s21, 0  ;;  %s58_s24 = sadd.s32 1, %s784_s18 }
   0x8   : > { %s984_s22 = smov (%p26_p0, %s25_s22), 0  ;;  %p566_p5 = scmp.ge.s32.totalorder %s796_s21, 2 }
   0x9   : > { %p67_p3 = por %p66_p2, %p65_p1  ;;  %s54_s23 = ssub.s32 %s792_s20, %s984_s22 }
   0xa   : > { %p56_p4 = scmp.eq.s32.totalorder %s54_s23, 0  ;;  %170 = sbr.rel (%p566_p5) target bundleno = 24 (0x18), region = 24 }
   0xc   : > { %s866_s25 = scalar_select %p56_p4, %s784_s18, %s58_s24  }
  0x11   : > { %173 = sbr.rel (!%p67_p3) target bundleno = 24 (0x18), region = 28  ;;  %s175_s26 = sand.u32 (%p67_p3), 1, %s784_s18  }
  0x12   : > { %s583_s27 = sshll.u32 (%p67_p3), %s792_s20, 4  ;;  %s567_s28 = sshll.u32 (%p67_p3), %s175_s26, 5 }
  0x13   : > { %s183_s5 = scalar_lea.vmem (%p67_p3), %s974_s1, %s583_s27  ;;  %s177_s6 = scalar_lea.vmem (%p67_p3), [#allocation4], %s567_s28 }
  0x14   : > { %v196_v0 = vld [vmem:[%s183_s5] sm:$0xff] (%p67_p3)  ;;  %v198_v1 = vld [vmem:[%s183_s5 + $0x8] sm:$0xff] (%p67_p3) }
  0x15   : > { %v200_v2 = vld [vmem:[%s183_s5 + $0x20] sm:$0xff] (%p67_p3)  ;;  %197 = vst [vmem:[%s177_s6] sm:$0xff] (%p67_p3), %v196_v0  ;;  %199 = vst [vmem:[%s177_s6 + $0x8] sm:$0xff] (%p67_p3), %v198_v1  ;;  %v202_v3 = vld [vmem:[%s183_s5 + $0x28] sm:$0xff] (%p67_p3) }
  0x16   : > { %201 = vst [vmem:[%s177_s6 + $0x10] sm:$0xff] (%p67_p3), %v200_v2  ;;  %203 = vst [vmem:[%s177_s6 + $0x18] sm:$0xff] (%p67_p3), %v202_v3 }
  0x18 PF: > { %p570_p6 = scmp.ge.s32.totalorder %s796_s21, 1  ;;  %p217_p7 = scmp.lt.s32.totalorder %s796_s21, 3 }
  0x1a   : > { %p218_p8 = pnand %p570_p6, %p217_p7 }
  0x1b   : > { %s224_s7 = sand.u32 (!%p218_p8), 1, %s780_s17   ;;  %s572_s8 = sshll.u32 (!%p218_p8), %s788_s19, 5 }
  0x1c   : > { %221 = sbr.rel (%p218_p8) target bundleno = 545 (0x221), region = 55  ;;  %s571_s9 = sshll.u32 (!%p218_p8), %s224_s7, 5 }
  0x1d   : > { %p252_p9 = scmp.lt.s32.totalorder (!%p218_p8), %s572_s8, 63  ;;  %s883_s14 = scalar_lea.vmem (!%p218_p8), [#allocation4], %s571_s9 }
  0x1e   : > { %p574_p10 = scmp.ne.s32.totalorder (!%p218_p8), %s788_s19, 0 }
  0x23   : > { %s986_s8 = smov (!%p252_p9, %s572_s8), 63  ;;  %261 = sbr.rel (%p574_p10) target bundleno = 42 (0x2a), region = 63 }
  0x24   : > { %s573_s10 = sshll.u32 %s986_s8, 3  ;;  %vm262_vm0 = vcmask (!%p574_p10), 31744   ;;  %v798_v4 = vmov (!%p574_p10), 0.0  }
  0x25   : > { %s881_s13 = scalar_lea.vmem %s975_s2, %s573_s10  ;;  %263 = vst.msk [vmem:[#allocation2] sm:$0xff] (!%p574_p10), %vm262_vm0, %v798_v4  ;;  %264 = vst.msk [vmem:[#allocation2 + $0x8] sm:$0xff] (!%p574_p10), %vm262_vm0, %v798_v4 }
  0x2a PF: > { %v287_v5 = vld [vmem:[%s881_s13 + $0x80] sm:$0xff]  ;;  %v288_v6 = vld [vmem:[%s881_s13 + $0x88] sm:$0xff]  ;;  %v289_v10 = vld [vmem:[%s881_s13 + $0x90] sm:$0xff]  ;;  %vm380_vm1 = vcmask 31744   ;;  %p575_p11 = scmp.ne.s32.totalorder %s788_s19, 1 }
  0x2b   : > { %v271_v7 = vld [vmem:[%s881_s13] sm:$0xff]  ;;  %v630_v8 = vpack.c.bf16 %v288_v6, %v287_v5  ;;  %v272_v9 = vld [vmem:[%s881_s13 + $0x8] sm:$0xff]  ;;  %v290_v11 = vld [vmem:[%s881_s13 + $0x98] sm:$0xff]  ;;  %vm400_vm2 = vcmask (!%p575_p11), 1043456   ;;  %s387_s17 = sld [smem:[#allocation3]] (!%p575_p11) }
  0x2c   : > { %v632_v12 = vpack.c.bf16 %v272_v9, %v271_v7  ;;  %v634_v13 = vpack.c.bf16 %v290_v11, %v289_v10  ;;  %v273_v14 = vld [vmem:[%s881_s13 + $0x10] sm:$0xff]  ;;  %v274_v15 = vld [vmem:[%s881_s13 + $0x18] sm:$0xff]  ;;  %v291_v16 = vld [vmem:[%s881_s13 + $0xa0] sm:$0xff] }
  0x2d   : > { %631 = vmatprep.subr.bf16.mxu0 %v630_v8  ;;  %662 = vmatprep.subr.bf16.mxu1 %v630_v8  ;;  %v292_v17 = vld [vmem:[%s881_s13 + $0xa8] sm:$0xff]  ;;  %v636_v18 = vpack.c.bf16 %v274_v15, %v273_v14  ;;  %v275_v20 = vld [vmem:[%s881_s13 + $0x20] sm:$0xff]  ;;  %v293_v22 = vld [vmem:[%s881_s13 + $0xb0] sm:$0xff] }
  0x2e   : > { %633 = vmatpush3.bf16.msra.mxu0 %v632_v12  ;;  %670 = vmatpush3.bf16.msra.mxu1 %v632_v12  ;;  %v638_v19 = vpack.c.bf16 %v292_v17, %v291_v16  ;;  %v276_v21 = vld [vmem:[%s881_s13 + $0x28] sm:$0xff]  ;;  %v294_v23 = vld [vmem:[%s881_s13 + $0xb8] sm:$0xff]  ;;  %v277_v26 = vld [vmem:[%s881_s13 + $0x30] sm:$0xff] }
  0x2f   : > { %635 = vmatprep.subr.bf16.mxu0 %v634_v13  ;;  %663 = vmatprep.subr.bf16.mxu1 %v634_v13  ;;  %v640_v24 = vpack.c.bf16 %v276_v21, %v275_v20  ;;  %v642_v25 = vpack.c.bf16 %v294_v23, %v293_v22  ;;  %v278_v27 = vld [vmem:[%s881_s13 + $0x38] sm:$0xff]  ;;  %v295_v28 = vld [vmem:[%s881_s13 + $0xc0] sm:$0xff]  ;;  %v296_v29 = vld [vmem:[%s881_s13 + $0xc8] sm:$0xff] }
  0x30   : > { %v268_v30 = vld [vmem:[%s883_s14 + $0x8] sm:$0xff]  ;;  %v270_v31 = vld [vmem:[%s883_s14 + $0x18] sm:$0xff]  ;;  %v644_v32 = vpack.c.bf16 %v278_v27, %v277_v26  ;;  %v646_v33 = vpack.c.bf16 %v296_v29, %v295_v28  ;;  %v279_v34 = vld [vmem:[%s881_s13 + $0x40] sm:$0xff] }
  0x31   : > { %367 = vmatprep.mubr.f32.mxu0 %v268_v30  ;;  %v280_v35 = vld [vmem:[%s881_s13 + $0x48] sm:$0xff]  ;;  %v297_v36 = vld [vmem:[%s881_s13 + $0xd0] sm:$0xff]  ;;  %v298_v37 = vld [vmem:[%s881_s13 + $0xd8] sm:$0xff]  ;;  %372 = vmatprep.mubr.f32.mxu1 %v270_v31  ;;  %v390_v6 = vstv (!%p575_p11), %s387_s17 }
  0x32   : > { %637 = vmatpush3.bf16.msra.mxu0 %v636_v18  ;;  %671 = vmatpush3.bf16.msra.mxu1 %v636_v18  ;;  %v648_v38 = vpack.c.bf16 %v280_v35, %v279_v34  ;;  %v650_v39 = vpack.c.bf16 %v298_v37, %v297_v36  ;;  %v281_v40 = vld [vmem:[%s881_s13 + $0x50] sm:$0xff]  ;;  %v282_v41 = vld [vmem:[%s881_s13 + $0x58] sm:$0xff]  ;;  %v299_v42 = vld [vmem:[%s881_s13 + $0xe0] sm:$0xff] }
  0x33   : > { %639 = vmatprep.subr.bf16.mxu0 %v638_v19  ;;  %664 = vmatprep.subr.bf16.mxu1 %v638_v19  ;;  %v300_v43 = vld [vmem:[%s881_s13 + $0xe8] sm:$0xff]  ;;  %v652_v44 = vpack.c.bf16 %v282_v41, %v281_v40  ;;  %v283_v46 = vld [vmem:[%s881_s13 + $0x60] sm:$0xff]  ;;  %v301_v48 = vld [vmem:[%s881_s13 + $0xf0] sm:$0xff] }
  0x34   : > { %v654_v45 = vpack.c.bf16 %v300_v43, %v299_v42  ;;  %v284_v47 = vld [vmem:[%s881_s13 + $0x68] sm:$0xff]  ;;  %v302_v49 = vld [vmem:[%s881_s13 + $0xf8] sm:$0xff]  ;;  %v285_v52 = vld [vmem:[%s881_s13 + $0x70] sm:$0xff] }
  0x35   : > { %v656_v50 = vpack.c.bf16 %v284_v47, %v283_v46  ;;  %v658_v51 = vpack.c.bf16 %v302_v49, %v301_v48  ;;  %v286_v53 = vld [vmem:[%s881_s13 + $0x78] sm:$0xff]  ;;  %v267_v55 = vld [vmem:[%s883_s14] sm:$0xff]  ;;  %v269_v56 = vld [vmem:[%s883_s14 + $0x10] sm:$0xff] }
  0x36   : > { %641 = vmatpush3.bf16.msra.mxu0 %v640_v24  ;;  %672 = vmatpush3.bf16.msra.mxu1 %v640_v24  ;;  %v660_v54 = vpack.c.bf16 %v286_v53, %v285_v52  ;;  %v265_v59 = vld [vmem:[#allocation2] sm:$0xff]  ;;  %v266_v61 = vld [vmem:[#allocation2 + $0x8] sm:$0xff] }
  0x37   : > { %643 = vmatprep.subr.bf16.mxu0 %v642_v25  ;;  %665 = vmatprep.subr.bf16.mxu1 %v642_v25  ;;  %v393_v3 = vld [vmem:[%s976_s3] sm:$0xf] (!%p575_p11) }
  0x3a   : > { %645 = vmatpush3.bf16.msra.mxu0 %v644_v32  ;;  %673 = vmatpush3.bf16.msra.mxu1 %v644_v32 }
  0x3b   : > { %647 = vmatprep.subr.bf16.mxu0 %v646_v33  ;;  %666 = vmatprep.subr.bf16.mxu1 %v646_v33 }
  0x3e   : > { %649 = vmatpush3.bf16.msra.mxu0 %v648_v38  ;;  %674 = vmatpush3.bf16.msra.mxu1 %v648_v38 }
  0x3f   : > { %651 = vmatprep.subr.bf16.mxu0 %v650_v39  ;;  %667 = vmatprep.subr.bf16.mxu1 %v650_v39 }
  0x42   : > { %653 = vmatpush3.bf16.msra.mxu0 %v652_v44  ;;  %675 = vmatpush3.bf16.msra.mxu1 %v652_v44 }
  0x43   : > { %655 = vmatprep.subr.bf16.mxu0 %v654_v45  ;;  %668 = vmatprep.subr.bf16.mxu1 %v654_v45 }
  0x46   : > { %657 = vmatpush3.bf16.msra.mxu0 %v656_v50  ;;  %676 = vmatpush3.bf16.msra.mxu1 %v656_v50 }
  0x47   : > { %659 = vmatprep.subr.bf16.mxu0 %v658_v51  ;;  %669 = vmatprep.subr.bf16.mxu1 %v658_v51 }
  0x4a   : > { %661 = vmatpush3.bf16.msra.mxu0 %v660_v54  ;;  %677 = vmatpush3.bf16.msra.mxu1 %v660_v54 }
  0x4b   : > { %625 = vmatprep.subr.msk.mxu0 (!%p575_p11), %vm400_vm2, %v393_v3 }
  0x4d   : > { %368 = vmatmul.mubr.f32.vlgmr.msra.gmra.mrb[0].mxu0 %v267_v55  ;;  %373 = vmatmul.mubr.f32.vlgmr.msra.gmra.mrb[0].mxu1 %v269_v56 }
  0x4e   : > { %626 = vmatpush3.msk.msra.mxu0 (!%p575_p11), %vm400_vm2, %v393_v3 }
 0x120   : > { %v616_v57 = vpop.f32.mrb[0].mxu0  ;;  %v619_v58 = vpop.f32.mrb[0].mxu1  ;;  %386 = sbr.rel (%p575_p11) target bundleno = 519 (0x207), region = 67 }
 0x121   : > { %v617_v60 = vpop.f32.mrb[1].mxu0  ;;  %v620_v62 = vpop.f32.mrb[1].mxu1 }
 0x122   : > { %v618_v63 = vadd.f32 %v617_v60, %v616_v57  ;;  %v621_v0 = vadd.f32 %v620_v62, %v619_v58 }
 0x124   : > { %v378_v1 = vadd.f32 %v618_v63, %v265_v59  ;;  %v379_v2 = vadd.f32 %v621_v0, %v266_v61 }
 0x126   : > { %381 = vst.msk [vmem:[#allocation2] sm:$0xff] %vm380_vm1, %v378_v1  ;;  %382 = vst.msk [vmem:[#allocation2 + $0x8] sm:$0xff] %vm380_vm1, %v379_v2 }
 0x12d   : > { %v388_v4 = vld [vmem:[#allocation2] sm:$0xff]  ;;  %v389_v5 = vld [vmem:[#allocation2 + $0x8] sm:$0xff] }
 0x12e   : > { %v391_v7 = vmul.f32 %v390_v6, %v388_v4  ;;  %v392_v8 = vmul.f32 %v390_v6, %v389_v5 }
 0x130   : > { %627 = vmatprep.mubr.msk.f32.mxu0 %vm380_vm1, %v391_v7 }
 0x131   : > { %628 = vmatmul.mubr.msk.f32.vlgmr.msra.gmra.mrb[0].mxu0 %vm380_vm1, %v392_v8 }
 0x204   : > { %v629_v9 = vpop.f32.mrb[0].mxu0 }
 0x205   : > { %480 = vst [vmem:[#allocation5 + $0x8] sm:$0xff] %v629_v9  ;;  %v470_v10 = vpop.f32.mrb[1].mxu0 }
 0x206   : > { %479 = vst [vmem:[#allocation5] sm:$0xff] %v470_v10 }
 0x207 PF: > { %p932_p12 = scmp.eq.s32.totalorder %s564_s0, 1  ;;  %s799_s23 = smov [#allocation5]  }
 0x208   : > { %s490_s24 = sshll.u32 %s799_s23, 4  ;;  %s491_s24 = int_to_ptr.vmem [resolvable:$true] %s490_s24 }
 0x209   : > { %s728_s26 = scalar_lea.vmem %s491_s24, 256  ;;  %p735_p2 = scmp.lt.s32.totalorder %s491_s24, %s491_s24 }
 0x20a   : > { %p729_p13 = scmp.ne.s32.totalorder %s491_s24, %s728_s26  ;;  %p736_p3 = scmp.lt.s32.totalorder %s728_s26, %s728_s26 }
 0x20c   : > { %p730_p0 = pnand %p729_p13, %p932_p12  ;;  %p737_p4 = por %p736_p3, %p735_p2 }
 0x20e   : > { %p731_p1 = pneg %p730_p0 }
 0x210   : > { %p738_p5 = pnand %p737_p4, %p731_p1 }
 0x212   : > { %741 = shalt.err (!%p738_p5)
}
 0x213   : > { %s742_s0 = scalar_lea.hbm %s977_s4, 256 }
 0x214   : > { %p743_p6 = scmp.ne.s32.totalorder %s977_s4, %s742_s0  ;;  %p748_p9 = scmp.lt.u32.totalorder %s742_s0, %s977_s4 }
 0x216   : > { %p744_p7 = pnand %p743_p6, %p932_p12 }
 0x218   : > { %p745_p8 = pneg %p744_p7 }
 0x21a   : > { %p750_p10 = pnand %p748_p9, %p745_p8 }
 0x21c   : > { %753 = shalt.err (!%p750_p10)
}
 0x21d   : > { %s800_s7 = smov 128   ;;  %s801_s8 = smov 8  }
 0x21e   : > { %679 = dma.vmem_to_hbm [thread:$0]  (%p932_p12), %s491_s24, 256, %s977_s4, [#allocation6], %s800_s7, %s800_s7, %s801_s8  }
 0x21f   : > { %775 = dma.done.wait (%p932_p12), [#allocation6], 256  }
 0x220   : > { %777 = vsyncadd (%p932_p12), [#allocation6], 4294967040 }
 0x221 PF: > { %s16_s21 = sadd.s32 1, %s796_s21   ;;  %s979_s17 = smov %s784_s18 }
 0x222   : > { %p13_p11 = scmp.ge.s32.totalorder %s16_s21, 4   ;;  %s980_s18 = smov %s866_s25 }
 0x223   : > { %s981_s19 = smov %s792_s20  ;;  %s982_s20 = smov %s984_s22 }
 0x224   :  { %15 = sbr.rel (!%p13_p11) target bundleno = 5 (0x5), region = 103 }
 0x22b   :  { %506 = vsyncpa [#allocation6], 1 }
 0x22c   :  { %508 = vsyncpa [#allocation6 + $0x1], 1 }

</bundles_post_ra>
